<compile_context>
chip_gen: v5e
topology: v5e:2x2
jax: 0.10.0
libtpu: 0.0.40
codegen_flags: <defaults>
</compile_context>

<pallas_src>
import jax
import jax.numpy as jnp
from jax import lax
from jax.experimental import pallas as pl
from jax.experimental.pallas import tpu as pltpu


def _pick_time_chunk(T):
    """Largest chunk <= 128 that divides T exactly (zero-padding T is NOT inert)."""
    for cand in (128, 64, 32, 16, 8, 4, 2, 1):
        if cand <= T and T % cand == 0:
            return cand
    return T


def lstm_kernel(x_ref, w_ih_ref, w_hh_ref, b_ref, out_ref, h_sc, c_sc):
    """One time-chunk of the LSTM recurrence over the fused (both-branch) batch.

    x_ref:    (Tc, Bp, Din)  time-major input chunk
    w_ih_ref: (Din, Gp)      packed-gate input weights (Gp = pad128(4H))
    w_hh_ref: (H, Gp)        packed-gate recurrent weights
    b_ref:    (1, Gp)        combined bias b_ih + b_hh
    out_ref:  (Bp, H)        final hidden state (resident across the grid)
    h_sc/c_sc:(Bp, H)        persistent carries across time chunks
    """
    chunk = pl.program_id(0)
    Tc, Bp, Din = x_ref.shape
    H = h_sc.shape[1]
    Gp = w_hh_ref.shape[1]

    @pl.when(chunk == 0)
    def _():
        h_sc[...] = jnp.zeros_like(h_sc)
        c_sc[...] = jnp.zeros_like(c_sc)

    # Lane constants for the single-tanh gate trick (computed once per chunk).
    lane = lax.broadcasted_iota(jnp.int32, (1, Gp), 1)
    is_g = (lane >= 2 * H) & (lane < 3 * H)        # tanh gate lanes
    is_pad = lane >= 4 * H                         # zero-padded lanes
    pre = jnp.where(is_g, 1.0, 0.5).astype(jnp.float32)            # pre-activation scale
    post_mul = jnp.broadcast_to(
        jnp.where(is_pad, 0.0, jnp.where(is_g, 1.0, 0.5)).astype(jnp.float32), (Bp, Gp))
    post_add = jnp.broadcast_to(
        jnp.where(is_pad | is_g, 0.0, 0.5).astype(jnp.float32), (Bp, Gp))

    # Pre-scaled weights: gates come out of the matmul already multiplied by
    # `pre`, so the gate nonlinearity is a single tanh + one VPU FMA per step.
    # (These are only ~2 vregs at H=16, so hoisting them is cheap.)
    w_hh = w_hh_ref[...] * pre                     # (H, Gp)
    b = b_ref[...] * pre                           # (1, Gp)
    if Din == 1:
        w_row = w_ih_ref[...] * pre                # (1, Gp) -> VPU broadcast FMA
    else:
        w_ih = w_ih_ref[...] * pre                 # (Din, Gp)

    def step(s, carry):
        h, c = carry                               # (Bp, H), (Bp, H)
        x_t = x_ref[s]                             # (Bp, Din) leading-axis load
        if Din == 1:
            gin = x_t * w_row + b                  # (Bp, Gp) VPU broadcast FMA
        else:
            gin = jnp.dot(x_t, w_ih, preferred_element_type=jnp.float32) + b
        gates = gin + jnp.dot(h, w_hh, preferred_element_type=jnp.float32)  # (Bp, Gp)
        act = jnp.tanh(gates) * post_mul + post_add        # sigmoid on i/f/o, tanh on g
        i_g = act[:, 0 * H:1 * H]
        f_g = act[:, 1 * H:2 * H]
        g_g = act[:, 2 * H:3 * H]
        o_g = act[:, 3 * H:4 * H]
        c_new = f_g * c + i_g * g_g
        h_new = o_g * jnp.tanh(c_new)
        return (h_new, c_new)

    unroll = Tc if Tc <= 16 else 8
    h_f, c_f = lax.fori_loop(0, Tc, step, (h_sc[...], c_sc[...]), unroll=unroll)

    h_sc[...] = h_f
    c_sc[...] = c_f
    out_ref[...] = h_f.astype(out_ref.dtype)


def contrastive_forward(x_i, x_j, params):
    """Returns (h_i, h_j), each of shape (B, H) — the LSTM final hidden states."""
    w_ih_t, w_hh_t, b = params                     # (Din, 4H), (H, 4H), (1, 4H)
    B, T, Din = x_i.shape
    H = w_hh_t.shape[0]
    G = 4 * H
    Gp = max(((G + 127) // 128) * 128, 128)        # packed gate block, lane-aligned
    B2 = 2 * B
    Bp = ((B2 + 7) // 8) * 8                       # sublane-aligned fused batch

    # Fuse the two contrastive branches into the batch and go time-major.
    # (Three tiny XLA prep ops; negligible at these sizes — for large B*T feed
    # the branches via index_maps instead of materializing xs.)
    xs = jnp.concatenate([x_i, x_j], axis=0)           # (2B, T, Din)
    xs = jnp.transpose(xs, (1, 0, 2))                  # (T, 2B, Din)
    xs = jnp.pad(xs, ((0, 0), (0, Bp - B2), (0, 0)))   # (T, Bp, Din)

    # Pack all four gates contiguously and zero-pad the combined 4H axis to Gp.
    pad_cols = ((0, 0), (0, Gp - G))
    w_ih_p = jnp.pad(w_ih_t, pad_cols)                 # (Din, Gp)
    w_hh_p = jnp.pad(w_hh_t, pad_cols)                 # (H, Gp)
    b_p = jnp.pad(b, pad_cols)                         # (1, Gp)

    Tc = _pick_time_chunk(T)
    num_chunks = T // Tc

    out = pl.pallas_call(
        lstm_kernel,
        out_shape=jax.ShapeDtypeStruct((Bp, H), jnp.float32),
        grid=(num_chunks,),
        in_specs=[
            pl.BlockSpec((Tc, Bp, Din), lambda t: (t, 0, 0)),
            pl.BlockSpec((Din, Gp), lambda t: (0, 0)),
            pl.BlockSpec((H, Gp), lambda t: (0, 0)),
            pl.BlockSpec((1, Gp), lambda t: (0, 0)),
        ],
        out_specs=pl.BlockSpec((Bp, H), lambda t: (0, 0)),
        scratch_shapes=[
            pltpu.VMEM((Bp, H), jnp.float32),          # h carry
            pltpu.VMEM((Bp, H), jnp.float32),          # c carry
        ],
        compiler_params=pltpu.CompilerParams(dimension_semantics=("arbitrary",)),
    )(xs, w_ih_p, w_hh_p, b_p)

    h = out[:B2]                                   # drop batch padding
    return h[:B], h[B:]


def init_lstm_params(key, input_dim, hidden_dim):
    """Deterministic init matching PyTorch LSTM param shapes (uniform(-k, k), k=1/sqrt(H))."""
    k = 1.0 / jnp.sqrt(jnp.float32(hidden_dim))
    k1, k2, k3, k4 = jax.random.split(key, 4)
    w_ih = jax.random.uniform(k1, (4 * hidden_dim, input_dim), jnp.float32, -k, k)
    w_hh = jax.random.uniform(k2, (4 * hidden_dim, hidden_dim), jnp.float32, -k, k)
    b_ih = jax.random.uniform(k3, (4 * hidden_dim,), jnp.float32, -k, k)
    b_hh = jax.random.uniform(k4, (4 * hidden_dim,), jnp.float32, -k, k)
    w_ih_t = w_ih.T                                # (Din, 4H)
    w_hh_t = w_hh.T                                # (H, 4H)
    b = (b_ih + b_hh).reshape(1, 4 * hidden_dim)
    return w_ih_t, w_hh_t, b


def lstm_reference(x, params):
    """Pure-JAX reference of PyTorch LSTM final hidden state (for verification)."""
    w_ih_t, w_hh_t, b = params
    B, T, Din = x.shape
    H = w_hh_t.shape[0]

    def step(carry, x_t):
        h, c = carry
        gates = x_t @ w_ih_t + h @ w_hh_t + b[0]
        i_g = jax.nn.sigmoid(gates[:, 0 * H:1 * H])
        f_g = jax.nn.sigmoid(gates[:, 1 * H:2 * H])
        g_g = jnp.tanh(gates[:, 2 * H:3 * H])
        o_g = jax.nn.sigmoid(gates[:, 3 * H:4 * H])
        c = f_g * c + i_g * g_g
        h = o_g * jnp.tanh(c)
        return (h, c), None

    (h, _), _ = lax.scan(step, (jnp.zeros((B, H)), jnp.zeros((B, H))),
                         jnp.transpose(x, (1, 0, 2)))
    return h


if __name__ == "__main__":
    INPUT_DIM = 1
    HIDDEN_DIM = 16
    B, T = 2, 8

    root = jax.random.PRNGKey(0)
    kp, ki, kj = jax.random.split(root, 3)

    params = init_lstm_params(kp, INPUT_DIM, HIDDEN_DIM)
    x_i = jax.random.normal(ki, (B, T, INPUT_DIM), jnp.float32)
    x_j = jax.random.normal(kj, (B, T, INPUT_DIM), jnp.float32)

    h_i, h_j = jax.jit(contrastive_forward)(x_i, x_j, params)
    jax.block_until_ready((h_i, h_j))

    # Verify against pure-JAX LSTM reference (all math kept in f32).
    ref_i = lstm_reference(x_i, params)
    ref_j = lstm_reference(x_j, params)
    assert h_i.shape == (B, HIDDEN_DIM) and h_j.shape == (B, HIDDEN_DIM)
    assert jnp.allclose(h_i, ref_i, atol=2e-5, rtol=2e-5)
    assert jnp.allclose(h_j, ref_j, atol=2e-5, rtol=2e-5)

    print("KERNEL_OK")
</pallas_src>

<mosaic_0001>
module attributes {stable_mosaic.version = 11 : i64} {
  func.func @lstm_kernel(%arg0: i32, %arg1: memref<8x8x1xf32, #tpu.memory_space<vmem>>, %arg2: memref<1x128xf32, #tpu.memory_space<vmem>>, %arg3: memref<16x128xf32, #tpu.memory_space<vmem>>, %arg4: memref<1x128xf32, #tpu.memory_space<vmem>>, %arg5: memref<8x16xf32, #tpu.memory_space<vmem>>, %arg6: memref<8x16xf32, #tpu.memory_space<vmem>>, %arg7: memref<8x16xf32, #tpu.memory_space<vmem>>) attributes {dimension_semantics = [#tpu.dimension_semantics<arbitrary>], iteration_bounds = array<i64: 1>, scalar_prefetch = 0 : i64, scratch_operands = 2 : i64, tpu.core_type = #tpu.core_type<tc>, window_params = [{transform_indices = @transform_0, window_bounds = array<i64: 8, 8, 1>}, {pipeline_mode = #tpu.pipeline_mode<synchronous>, transform_indices = @transform_1, window_bounds = array<i64: 1, 128>}, {pipeline_mode = #tpu.pipeline_mode<synchronous>, transform_indices = @transform_2, window_bounds = array<i64: 16, 128>}, {pipeline_mode = #tpu.pipeline_mode<synchronous>, transform_indices = @transform_3, window_bounds = array<i64: 1, 128>}, {pipeline_mode = #tpu.pipeline_mode<synchronous>, transform_indices = @transform_4, window_bounds = array<i64: 8, 16>}]} {
    %c0_i32 = arith.constant 0 : i32
    %0 = arith.cmpi eq, %arg0, %c0_i32 : i32
    %1 = arith.extui %0 : i1 to i32
    %c0_i32_0 = arith.constant 0 : i32
    %2 = arith.cmpi ne, %1, %c0_i32_0 : i32
    scf.if %2 {
      %cst_47 = arith.constant 0.000000e+00 : f32
      %215 = vector.broadcast %cst_47 : f32 to vector<8x16xf32>
      %c0_48 = arith.constant 0 : index
      %c0_49 = arith.constant 0 : index
      %216 = vector.load %arg6[%c0_48, %c0_49] : memref<8x16xf32, #tpu.memory_space<vmem>>, vector<8x16xf32>
      tpu.vector_store %arg6[%c0_48, %c0_49], %215 {strides = array<i32>} : memref<8x16xf32, #tpu.memory_space<vmem>>, vector<8x16xf32>,
      %cst_50 = arith.constant 0.000000e+00 : f32
      %217 = vector.broadcast %cst_50 : f32 to vector<8x16xf32>
      %c0_51 = arith.constant 0 : index
      %c0_52 = arith.constant 0 : index
      %218 = vector.load %arg7[%c0_51, %c0_52] : memref<8x16xf32, #tpu.memory_space<vmem>>, vector<8x16xf32>
      tpu.vector_store %arg7[%c0_51, %c0_52], %217 {strides = array<i32>} : memref<8x16xf32, #tpu.memory_space<vmem>>, vector<8x16xf32>,
    } else {
    }
    %3 = tpu.iota {dimensions = array<i32: 1>} : vector<1x128xi32>
    %c32_i32 = arith.constant 32 : i32
    %4 = vector.broadcast %c32_i32 : i32 to vector<1x128xi32>
    %5 = arith.cmpi sge, %3, %4 : vector<1x128xi32>
    %c48_i32 = arith.constant 48 : i32
    %6 = vector.broadcast %c48_i32 : i32 to vector<1x128xi32>
    %7 = arith.cmpi slt, %3, %6 : vector<1x128xi32>
    %8 = arith.andi %5, %7 : vector<1x128xi1>
    %c64_i32 = arith.constant 64 : i32
    %9 = vector.broadcast %c64_i32 : i32 to vector<1x128xi32>
    %10 = arith.cmpi sge, %3, %9 : vector<1x128xi32>
    %cst = arith.constant 1.000000e+00 : f32
    %cst_1 = arith.constant 5.000000e-01 : f32
    %11 = vector.broadcast %cst : f32 to vector<1x128xf32>
    %12 = vector.broadcast %cst_1 : f32 to vector<1x128xf32>
    %13 = arith.select %8, %11, %12 : vector<1x128xi1>, vector<1x128xf32>
    %cst_2 = arith.constant 1.000000e+00 : f32
    %cst_3 = arith.constant 5.000000e-01 : f32
    %14 = vector.broadcast %cst_2 : f32 to vector<1x128xf32>
    %15 = vector.broadcast %cst_3 : f32 to vector<1x128xf32>
    %16 = arith.select %8, %14, %15 : vector<1x128xi1>, vector<1x128xf32>
    %cst_4 = arith.constant 0.000000e+00 : f32
    %17 = vector.broadcast %cst_4 : f32 to vector<1x128xf32>
    %18 = arith.select %10, %17, %16 : vector<1x128xi1>, vector<1x128xf32>
    %19 = vector.shape_cast %18 : vector<1x128xf32> to vector<1x128xf32>
    %20 = vector.broadcast %19 : vector<1x128xf32> to vector<8x128xf32>
    %21 = arith.ori %10, %8 : vector<1x128xi1>
    %cst_5 = arith.constant 0.000000e+00 : f32
    %cst_6 = arith.constant 5.000000e-01 : f32
    %22 = vector.broadcast %cst_5 : f32 to vector<1x128xf32>
    %23 = vector.broadcast %cst_6 : f32 to vector<1x128xf32>
    %24 = arith.select %21, %22, %23 : vector<1x128xi1>, vector<1x128xf32>
    %25 = vector.shape_cast %24 : vector<1x128xf32> to vector<1x128xf32>
    %26 = vector.broadcast %25 : vector<1x128xf32> to vector<8x128xf32>
    %c0 = arith.constant 0 : index
    %c0_7 = arith.constant 0 : index
    %27 = vector.load %arg3[%c0, %c0_7] : memref<16x128xf32, #tpu.memory_space<vmem>>, vector<16x128xf32>
    %28 = vector.broadcast %13 : vector<1x128xf32> to vector<16x128xf32>
    %29 = arith.mulf %27, %28 : vector<16x128xf32>
    %c0_8 = arith.constant 0 : index
    %c0_9 = arith.constant 0 : index
    %30 = vector.load %arg4[%c0_8, %c0_9] : memref<1x128xf32, #tpu.memory_space<vmem>>, vector<1x128xf32>
    %31 = arith.mulf %30, %13 : vector<1x128xf32>
    %c0_10 = arith.constant 0 : index
    %c0_11 = arith.constant 0 : index
    %32 = vector.load %arg2[%c0_10, %c0_11] : memref<1x128xf32, #tpu.memory_space<vmem>>, vector<1x128xf32>
    %33 = arith.mulf %32, %13 : vector<1x128xf32>
    %c0_12 = arith.constant 0 : index
    %c0_13 = arith.constant 0 : index
    %34 = vector.load %arg6[%c0_12, %c0_13] : memref<8x16xf32, #tpu.memory_space<vmem>>, vector<8x16xf32>
    %c0_14 = arith.constant 0 : index
    %c0_15 = arith.constant 0 : index
    %35 = vector.load %arg7[%c0_14, %c0_15] : memref<8x16xf32, #tpu.memory_space<vmem>>, vector<8x16xf32>
    %c0_i32_16 = arith.constant 0 : i32
    %36 = arith.index_cast %c0_i32_16 : i32 to index
    %c0_17 = arith.constant 0 : index
    %c0_18 = arith.constant 0 : index
    %37 = vector.load %arg1[%36, %c0_17, %c0_18] : memref<8x8x1xf32, #tpu.memory_space<vmem>>, vector<1x8x1xf32>
    %38 = vector.shape_cast %37 : vector<1x8x1xf32> to vector<8x1xf32>
    %39 = vector.broadcast %38 : vector<8x1xf32> to vector<8x128xf32>
    %40 = vector.broadcast %33 : vector<1x128xf32> to vector<8x128xf32>
    %41 = arith.mulf %39, %40 : vector<8x128xf32>
    %42 = vector.broadcast %31 : vector<1x128xf32> to vector<8x128xf32>
    %43 = arith.addf %41, %42 : vector<8x128xf32>
    %cst_19 = arith.constant dense<0.000000e+00> : vector<8x128xf32>
    %44 = tpu.matmul %34, %29, %cst_19 {dimension_numbers = #tpu.dot_dimension_numbers<[1], [0], [0], [1], [0, 0, 1, 1], [], []>} : vector<8x16xf32>, vector<16x128xf32>, vector<8x128xf32> -> vector<8x128xf32>
    %45 = arith.addf %43, %44 : vector<8x128xf32>
    %46 = math.tanh %45 : vector<8x128xf32>
    %47 = arith.mulf %46, %20 : vector<8x128xf32>
    %48 = arith.addf %47, %26 : vector<8x128xf32>
    %49 = vector.extract_strided_slice %48 {offsets = [0, 0], sizes = [8, 16], strides = [1, 1]} : vector<8x128xf32> to vector<8x16xf32>
    %50 = vector.extract_strided_slice %48 {offsets = [0, 16], sizes = [8, 16], strides = [1, 1]} : vector<8x128xf32> to vector<8x16xf32>
    %51 = vector.extract_strided_slice %48 {offsets = [0, 32], sizes = [8, 16], strides = [1, 1]} : vector<8x128xf32> to vector<8x16xf32>
    %52 = vector.extract_strided_slice %48 {offsets = [0, 48], sizes = [8, 16], strides = [1, 1]} : vector<8x128xf32> to vector<8x16xf32>
    %53 = arith.mulf %50, %35 : vector<8x16xf32>
    %54 = arith.mulf %49, %51 : vector<8x16xf32>
    %55 = arith.addf %53, %54 : vector<8x16xf32>
    %56 = math.tanh %55 : vector<8x16xf32>
    %57 = arith.mulf %52, %56 : vector<8x16xf32>
    %c1_i32 = arith.constant 1 : i32
    %58 = arith.index_cast %c1_i32 : i32 to index
    %c0_20 = arith.constant 0 : index
    %c0_21 = arith.constant 0 : index
    %59 = vector.load %arg1[%58, %c0_20, %c0_21] : memref<8x8x1xf32, #tpu.memory_space<vmem>>, vector<1x8x1xf32>
    %60 = vector.shape_cast %59 : vector<1x8x1xf32> to vector<8x1xf32>
    %61 = vector.broadcast %60 : vector<8x1xf32> to vector<8x128xf32>
    %62 = vector.broadcast %33 : vector<1x128xf32> to vector<8x128xf32>
    %63 = arith.mulf %61, %62 : vector<8x128xf32>
    %64 = vector.broadcast %31 : vector<1x128xf32> to vector<8x128xf32>
    %65 = arith.addf %63, %64 : vector<8x128xf32>
    %cst_22 = arith.constant dense<0.000000e+00> : vector<8x128xf32>
    %66 = tpu.matmul %57, %29, %cst_22 {dimension_numbers = #tpu.dot_dimension_numbers<[1], [0], [0], [1], [0, 0, 1, 1], [], []>} : vector<8x16xf32>, vector<16x128xf32>, vector<8x128xf32> -> vector<8x128xf32>
    %67 = arith.addf %65, %66 : vector<8x128xf32>
    %68 = math.tanh %67 : vector<8x128xf32>
    %69 = arith.mulf %68, %20 : vector<8x128xf32>
    %70 = arith.addf %69, %26 : vector<8x128xf32>
    %71 = vector.extract_strided_slice %70 {offsets = [0, 0], sizes = [8, 16], strides = [1, 1]} : vector<8x128xf32> to vector<8x16xf32>
    %72 = vector.extract_strided_slice %70 {offsets = [0, 16], sizes = [8, 16], strides = [1, 1]} : vector<8x128xf32> to vector<8x16xf32>
    %73 = vector.extract_strided_slice %70 {offsets = [0, 32], sizes = [8, 16], strides = [1, 1]} : vector<8x128xf32> to vector<8x16xf32>
    %74 = vector.extract_strided_slice %70 {offsets = [0, 48], sizes = [8, 16], strides = [1, 1]} : vector<8x128xf32> to vector<8x16xf32>
    %75 = arith.mulf %72, %55 : vector<8x16xf32>
    %76 = arith.mulf %71, %73 : vector<8x16xf32>
    %77 = arith.addf %75, %76 : vector<8x16xf32>
    %78 = math.tanh %77 : vector<8x16xf32>
    %79 = arith.mulf %74, %78 : vector<8x16xf32>
    %c2_i32 = arith.constant 2 : i32
    %80 = arith.index_cast %c2_i32 : i32 to index
    %c0_23 = arith.constant 0 : index
    %c0_24 = arith.constant 0 : index
    %81 = vector.load %arg1[%80, %c0_23, %c0_24] : memref<8x8x1xf32, #tpu.memory_space<vmem>>, vector<1x8x1xf32>
    %82 = vector.shape_cast %81 : vector<1x8x1xf32> to vector<8x1xf32>
    %83 = vector.broadcast %82 : vector<8x1xf32> to vector<8x128xf32>
    %84 = vector.broadcast %33 : vector<1x128xf32> to vector<8x128xf32>
    %85 = arith.mulf %83, %84 : vector<8x128xf32>
    %86 = vector.broadcast %31 : vector<1x128xf32> to vector<8x128xf32>
    %87 = arith.addf %85, %86 : vector<8x128xf32>
    %cst_25 = arith.constant dense<0.000000e+00> : vector<8x128xf32>
    %88 = tpu.matmul %79, %29, %cst_25 {dimension_numbers = #tpu.dot_dimension_numbers<[1], [0], [0], [1], [0, 0, 1, 1], [], []>} : vector<8x16xf32>, vector<16x128xf32>, vector<8x128xf32> -> vector<8x128xf32>
    %89 = arith.addf %87, %88 : vector<8x128xf32>
    %90 = math.tanh %89 : vector<8x128xf32>
    %91 = arith.mulf %90, %20 : vector<8x128xf32>
    %92 = arith.addf %91, %26 : vector<8x128xf32>
    %93 = vector.extract_strided_slice %92 {offsets = [0, 0], sizes = [8, 16], strides = [1, 1]} : vector<8x128xf32> to vector<8x16xf32>
    %94 = vector.extract_strided_slice %92 {offsets = [0, 16], sizes = [8, 16], strides = [1, 1]} : vector<8x128xf32> to vector<8x16xf32>
    %95 = vector.extract_strided_slice %92 {offsets = [0, 32], sizes = [8, 16], strides = [1, 1]} : vector<8x128xf32> to vector<8x16xf32>
    %96 = vector.extract_strided_slice %92 {offsets = [0, 48], sizes = [8, 16], strides = [1, 1]} : vector<8x128xf32> to vector<8x16xf32>
    %97 = arith.mulf %94, %77 : vector<8x16xf32>
    %98 = arith.mulf %93, %95 : vector<8x16xf32>
    %99 = arith.addf %97, %98 : vector<8x16xf32>
    %100 = math.tanh %99 : vector<8x16xf32>
    %101 = arith.mulf %96, %100 : vector<8x16xf32>
    %c3_i32 = arith.constant 3 : i32
    %102 = arith.index_cast %c3_i32 : i32 to index
    %c0_26 = arith.constant 0 : index
    %c0_27 = arith.constant 0 : index
    %103 = vector.load %arg1[%102, %c0_26, %c0_27] : memref<8x8x1xf32, #tpu.memory_space<vmem>>, vector<1x8x1xf32>
    %104 = vector.shape_cast %103 : vector<1x8x1xf32> to vector<8x1xf32>
    %105 = vector.broadcast %104 : vector<8x1xf32> to vector<8x128xf32>
    %106 = vector.broadcast %33 : vector<1x128xf32> to vector<8x128xf32>
    %107 = arith.mulf %105, %106 : vector<8x128xf32>
    %108 = vector.broadcast %31 : vector<1x128xf32> to vector<8x128xf32>
    %109 = arith.addf %107, %108 : vector<8x128xf32>
    %cst_28 = arith.constant dense<0.000000e+00> : vector<8x128xf32>
    %110 = tpu.matmul %101, %29, %cst_28 {dimension_numbers = #tpu.dot_dimension_numbers<[1], [0], [0], [1], [0, 0, 1, 1], [], []>} : vector<8x16xf32>, vector<16x128xf32>, vector<8x128xf32> -> vector<8x128xf32>
    %111 = arith.addf %109, %110 : vector<8x128xf32>
    %112 = math.tanh %111 : vector<8x128xf32>
    %113 = arith.mulf %112, %20 : vector<8x128xf32>
    %114 = arith.addf %113, %26 : vector<8x128xf32>
    %115 = vector.extract_strided_slice %114 {offsets = [0, 0], sizes = [8, 16], strides = [1, 1]} : vector<8x128xf32> to vector<8x16xf32>
    %116 = vector.extract_strided_slice %114 {offsets = [0, 16], sizes = [8, 16], strides = [1, 1]} : vector<8x128xf32> to vector<8x16xf32>
    %117 = vector.extract_strided_slice %114 {offsets = [0, 32], sizes = [8, 16], strides = [1, 1]} : vector<8x128xf32> to vector<8x16xf32>
    %118 = vector.extract_strided_slice %114 {offsets = [0, 48], sizes = [8, 16], strides = [1, 1]} : vector<8x128xf32> to vector<8x16xf32>
    %119 = arith.mulf %116, %99 : vector<8x16xf32>
    %120 = arith.mulf %115, %117 : vector<8x16xf32>
    %121 = arith.addf %119, %120 : vector<8x16xf32>
    %122 = math.tanh %121 : vector<8x16xf32>
    %123 = arith.mulf %118, %122 : vector<8x16xf32>
    %c4_i32 = arith.constant 4 : i32
    %124 = arith.index_cast %c4_i32 : i32 to index
    %c0_29 = arith.constant 0 : index
    %c0_30 = arith.constant 0 : index
    %125 = vector.load %arg1[%124, %c0_29, %c0_30] : memref<8x8x1xf32, #tpu.memory_space<vmem>>, vector<1x8x1xf32>
    %126 = vector.shape_cast %125 : vector<1x8x1xf32> to vector<8x1xf32>
    %127 = vector.broadcast %126 : vector<8x1xf32> to vector<8x128xf32>
    %128 = vector.broadcast %33 : vector<1x128xf32> to vector<8x128xf32>
    %129 = arith.mulf %127, %128 : vector<8x128xf32>
    %130 = vector.broadcast %31 : vector<1x128xf32> to vector<8x128xf32>
    %131 = arith.addf %129, %130 : vector<8x128xf32>
    %cst_31 = arith.constant dense<0.000000e+00> : vector<8x128xf32>
    %132 = tpu.matmul %123, %29, %cst_31 {dimension_numbers = #tpu.dot_dimension_numbers<[1], [0], [0], [1], [0, 0, 1, 1], [], []>} : vector<8x16xf32>, vector<16x128xf32>, vector<8x128xf32> -> vector<8x128xf32>
    %133 = arith.addf %131, %132 : vector<8x128xf32>
    %134 = math.tanh %133 : vector<8x128xf32>
    %135 = arith.mulf %134, %20 : vector<8x128xf32>
    %136 = arith.addf %135, %26 : vector<8x128xf32>
    %137 = vector.extract_strided_slice %136 {offsets = [0, 0], sizes = [8, 16], strides = [1, 1]} : vector<8x128xf32> to vector<8x16xf32>
    %138 = vector.extract_strided_slice %136 {offsets = [0, 16], sizes = [8, 16], strides = [1, 1]} : vector<8x128xf32> to vector<8x16xf32>
    %139 = vector.extract_strided_slice %136 {offsets = [0, 32], sizes = [8, 16], strides = [1, 1]} : vector<8x128xf32> to vector<8x16xf32>
    %140 = vector.extract_strided_slice %136 {offsets = [0, 48], sizes = [8, 16], strides = [1, 1]} : vector<8x128xf32> to vector<8x16xf32>
    %141 = arith.mulf %138, %121 : vector<8x16xf32>
    %142 = arith.mulf %137, %139 : vector<8x16xf32>
    %143 = arith.addf %141, %142 : vector<8x16xf32>
    %144 = math.tanh %143 : vector<8x16xf32>
    %145 = arith.mulf %140, %144 : vector<8x16xf32>
    %c5_i32 = arith.constant 5 : i32
    %146 = arith.index_cast %c5_i32 : i32 to index
    %c0_32 = arith.constant 0 : index
    %c0_33 = arith.constant 0 : index
    %147 = vector.load %arg1[%146, %c0_32, %c0_33] : memref<8x8x1xf32, #tpu.memory_space<vmem>>, vector<1x8x1xf32>
    %148 = vector.shape_cast %147 : vector<1x8x1xf32> to vector<8x1xf32>
    %149 = vector.broadcast %148 : vector<8x1xf32> to vector<8x128xf32>
    %150 = vector.broadcast %33 : vector<1x128xf32> to vector<8x128xf32>
    %151 = arith.mulf %149, %150 : vector<8x128xf32>
    %152 = vector.broadcast %31 : vector<1x128xf32> to vector<8x128xf32>
    %153 = arith.addf %151, %152 : vector<8x128xf32>
    %cst_34 = arith.constant dense<0.000000e+00> : vector<8x128xf32>
    %154 = tpu.matmul %145, %29, %cst_34 {dimension_numbers = #tpu.dot_dimension_numbers<[1], [0], [0], [1], [0, 0, 1, 1], [], []>} : vector<8x16xf32>, vector<16x128xf32>, vector<8x128xf32> -> vector<8x128xf32>
    %155 = arith.addf %153, %154 : vector<8x128xf32>
    %156 = math.tanh %155 : vector<8x128xf32>
    %157 = arith.mulf %156, %20 : vector<8x128xf32>
    %158 = arith.addf %157, %26 : vector<8x128xf32>
    %159 = vector.extract_strided_slice %158 {offsets = [0, 0], sizes = [8, 16], strides = [1, 1]} : vector<8x128xf32> to vector<8x16xf32>
    %160 = vector.extract_strided_slice %158 {offsets = [0, 16], sizes = [8, 16], strides = [1, 1]} : vector<8x128xf32> to vector<8x16xf32>
    %161 = vector.extract_strided_slice %158 {offsets = [0, 32], sizes = [8, 16], strides = [1, 1]} : vector<8x128xf32> to vector<8x16xf32>
    %162 = vector.extract_strided_slice %158 {offsets = [0, 48], sizes = [8, 16], strides = [1, 1]} : vector<8x128xf32> to vector<8x16xf32>
    %163 = arith.mulf %160, %143 : vector<8x16xf32>
    %164 = arith.mulf %159, %161 : vector<8x16xf32>
    %165 = arith.addf %163, %164 : vector<8x16xf32>
    %166 = math.tanh %165 : vector<8x16xf32>
    %167 = arith.mulf %162, %166 : vector<8x16xf32>
    %c6_i32 = arith.constant 6 : i32
    %168 = arith.index_cast %c6_i32 : i32 to index
    %c0_35 = arith.constant 0 : index
    %c0_36 = arith.constant 0 : index
    %169 = vector.load %arg1[%168, %c0_35, %c0_36] : memref<8x8x1xf32, #tpu.memory_space<vmem>>, vector<1x8x1xf32>
    %170 = vector.shape_cast %169 : vector<1x8x1xf32> to vector<8x1xf32>
    %171 = vector.broadcast %170 : vector<8x1xf32> to vector<8x128xf32>
    %172 = vector.broadcast %33 : vector<1x128xf32> to vector<8x128xf32>
    %173 = arith.mulf %171, %172 : vector<8x128xf32>
    %174 = vector.broadcast %31 : vector<1x128xf32> to vector<8x128xf32>
    %175 = arith.addf %173, %174 : vector<8x128xf32>
    %cst_37 = arith.constant dense<0.000000e+00> : vector<8x128xf32>
    %176 = tpu.matmul %167, %29, %cst_37 {dimension_numbers = #tpu.dot_dimension_numbers<[1], [0], [0], [1], [0, 0, 1, 1], [], []>} : vector<8x16xf32>, vector<16x128xf32>, vector<8x128xf32> -> vector<8x128xf32>
    %177 = arith.addf %175, %176 : vector<8x128xf32>
    %178 = math.tanh %177 : vector<8x128xf32>
    %179 = arith.mulf %178, %20 : vector<8x128xf32>
    %180 = arith.addf %179, %26 : vector<8x128xf32>
    %181 = vector.extract_strided_slice %180 {offsets = [0, 0], sizes = [8, 16], strides = [1, 1]} : vector<8x128xf32> to vector<8x16xf32>
    %182 = vector.extract_strided_slice %180 {offsets = [0, 16], sizes = [8, 16], strides = [1, 1]} : vector<8x128xf32> to vector<8x16xf32>
    %183 = vector.extract_strided_slice %180 {offsets = [0, 32], sizes = [8, 16], strides = [1, 1]} : vector<8x128xf32> to vector<8x16xf32>
    %184 = vector.extract_strided_slice %180 {offsets = [0, 48], sizes = [8, 16], strides = [1, 1]} : vector<8x128xf32> to vector<8x16xf32>
    %185 = arith.mulf %182, %165 : vector<8x16xf32>
    %186 = arith.mulf %181, %183 : vector<8x16xf32>
    %187 = arith.addf %185, %186 : vector<8x16xf32>
    %188 = math.tanh %187 : vector<8x16xf32>
    %189 = arith.mulf %184, %188 : vector<8x16xf32>
    %c7_i32 = arith.constant 7 : i32
    %190 = arith.index_cast %c7_i32 : i32 to index
    %c0_38 = arith.constant 0 : index
    %c0_39 = arith.constant 0 : index
    %191 = vector.load %arg1[%190, %c0_38, %c0_39] : memref<8x8x1xf32, #tpu.memory_space<vmem>>, vector<1x8x1xf32>
    %192 = vector.shape_cast %191 : vector<1x8x1xf32> to vector<8x1xf32>
    %193 = vector.broadcast %192 : vector<8x1xf32> to vector<8x128xf32>
    %194 = vector.broadcast %33 : vector<1x128xf32> to vector<8x128xf32>
    %195 = arith.mulf %193, %194 : vector<8x128xf32>
    %196 = vector.broadcast %31 : vector<1x128xf32> to vector<8x128xf32>
    %197 = arith.addf %195, %196 : vector<8x128xf32>
    %cst_40 = arith.constant dense<0.000000e+00> : vector<8x128xf32>
    %198 = tpu.matmul %189, %29, %cst_40 {dimension_numbers = #tpu.dot_dimension_numbers<[1], [0], [0], [1], [0, 0, 1, 1], [], []>} : vector<8x16xf32>, vector<16x128xf32>, vector<8x128xf32> -> vector<8x128xf32>
    %199 = arith.addf %197, %198 : vector<8x128xf32>
    %200 = math.tanh %199 : vector<8x128xf32>
    %201 = arith.mulf %200, %20 : vector<8x128xf32>
    %202 = arith.addf %201, %26 : vector<8x128xf32>
    %203 = vector.extract_strided_slice %202 {offsets = [0, 0], sizes = [8, 16], strides = [1, 1]} : vector<8x128xf32> to vector<8x16xf32>
    %204 = vector.extract_strided_slice %202 {offsets = [0, 16], sizes = [8, 16], strides = [1, 1]} : vector<8x128xf32> to vector<8x16xf32>
    %205 = vector.extract_strided_slice %202 {offsets = [0, 32], sizes = [8, 16], strides = [1, 1]} : vector<8x128xf32> to vector<8x16xf32>
    %206 = vector.extract_strided_slice %202 {offsets = [0, 48], sizes = [8, 16], strides = [1, 1]} : vector<8x128xf32> to vector<8x16xf32>
    %207 = arith.mulf %204, %187 : vector<8x16xf32>
    %208 = arith.mulf %203, %205 : vector<8x16xf32>
    %209 = arith.addf %207, %208 : vector<8x16xf32>
    %210 = math.tanh %209 : vector<8x16xf32>
    %211 = arith.mulf %206, %210 : vector<8x16xf32>
    %c8_i32 = arith.constant 8 : i32
    %c0_41 = arith.constant 0 : index
    %c0_42 = arith.constant 0 : index
    %212 = vector.load %arg6[%c0_41, %c0_42] : memref<8x16xf32, #tpu.memory_space<vmem>>, vector<8x16xf32>
    tpu.vector_store %arg6[%c0_41, %c0_42], %211 {strides = array<i32>} : memref<8x16xf32, #tpu.memory_space<vmem>>, vector<8x16xf32>,
    %c0_43 = arith.constant 0 : index
    %c0_44 = arith.constant 0 : index
    %213 = vector.load %arg7[%c0_43, %c0_44] : memref<8x16xf32, #tpu.memory_space<vmem>>, vector<8x16xf32>
    tpu.vector_store %arg7[%c0_43, %c0_44], %209 {strides = array<i32>} : memref<8x16xf32, #tpu.memory_space<vmem>>, vector<8x16xf32>,
    %c0_45 = arith.constant 0 : index
    %c0_46 = arith.constant 0 : index
    %214 = vector.load %arg5[%c0_45, %c0_46] : memref<8x16xf32, #tpu.memory_space<vmem>>, vector<8x16xf32>
    tpu.vector_store %arg5[%c0_45, %c0_46], %211 {strides = array<i32>} : memref<8x16xf32, #tpu.memory_space<vmem>>, vector<8x16xf32>,
    return
  }
  func.func @transform_0(%arg0: i32) -> (i32, i32, i32) {
    %c0_i32 = arith.constant 0 : i32
    %c0_i32_0 = arith.constant 0 : i32
    %c0_i32_1 = arith.constant 0 : i32
    return %arg0, %c0_i32, %c0_i32_0 : i32, i32, i32
  }
  func.func @transform_1(%arg0: i32) -> (i32, i32) {
    %c0_i32 = arith.constant 0 : i32
    %c0_i32_0 = arith.constant 0 : i32
    %c0_i32_1 = arith.constant 0 : i32
    return %c0_i32, %c0_i32_0 : i32, i32
  }
  func.func @transform_2(%arg0: i32) -> (i32, i32) {
    %c0_i32 = arith.constant 0 : i32
    %c0_i32_0 = arith.constant 0 : i32
    %c0_i32_1 = arith.constant 0 : i32
    return %c0_i32, %c0_i32_0 : i32, i32
  }
  func.func @transform_3(%arg0: i32) -> (i32, i32) {
    %c0_i32 = arith.constant 0 : i32
    %c0_i32_0 = arith.constant 0 : i32
    %c0_i32_1 = arith.constant 0 : i32
    return %c0_i32, %c0_i32_0 : i32, i32
  }
  func.func @transform_4(%arg0: i32) -> (i32, i32) {
    %c0_i32 = arith.constant 0 : i32
    %c0_i32_0 = arith.constant 0 : i32
    %c0_i32_1 = arith.constant 0 : i32
    return %c0_i32, %c0_i32_0 : i32, i32
  }
}

</mosaic_0001>

<bundles_post_ra>
// kernel: contrastive_forward.1
= control target key start
LH: loop header
LB: loop body
LE: loop exit
PB: predicated region body
PF: predicated region fallthrough
CT: control target
= control target key end

     0   :  { %v24_v0 = vlaneseq  ;;  %vm21_vm0 = vcmask 130048   ;;  %v565_v1 = vmov 0.0   ;;  %v566_v4 = vmov 0   ;;  %s568_s21 = smov 16   ;;  %s570_s26 = smov 32   ;;  %s731_s0 = inlined_call_operand.vmem [shape: f32[8,8,1], index: 0, kind: input, shape index: {}]   ;;  %s732_s2 = inlined_call_operand.vmem [shape: f32[16,128], index: 2, kind: input, shape index: {}]   ;;  %s733_s1 = inlined_call_operand.vmem [shape: f32[1,128], index: 1, kind: input, shape index: {}]   ;;  %s734_s3 = inlined_call_operand.vmem [shape: f32[1,128], index: 3, kind: input, shape index: {}]   ;;  %s735_s4 = inlined_call_operand.vmem [shape: f32[8,16], index: 4, kind: output, shape index: {}]  }
   0x1   :  { %22 = vst.msk [vmem:[#allocation2] sm:$0xff] %vm21_vm0, %v565_v1  ;;  %v44_v2 = vld [vmem:[%s731_s0] sm:$0xff]  ;;  %530 = vset.pattern.permute.xlu0 %v566_v4  ;;  %531 = vset.pattern.permute.xlu2 %v566_v4  ;;  %v35_v5 = vld [vmem:[%s732_s2 + $0x8] sm:$0xff]  ;;  %v567_v8 = vmov 0.5   ;;  %s571_s27 = smov 80   ;;  %v510_v57 = vld [vmem:[%s731_s0 + $0x10] sm:$0xff] }
   0x2   :  { %v25_v3 = vand.u32 127, %v24_v0  ;;  %23 = vst.msk [vmem:[#allocation3] sm:$0xff] %vm21_vm0, %v565_v1  ;;  %47 = vperm.xlu0 %530, %v44_v2   ;;  %532 = vset.pattern.permute.xlu1 %v566_v4  ;;  %v34_v6 = vld [vmem:[%s732_s2] sm:$0xff]  ;;  %v508_v30 = vld [vmem:[%s731_s0 + $0x8] sm:$0xff] }
   0x3   :  { %v40_v14 = vld [vmem:[%s733_s1] sm:$0x1]  ;;  %s569_s1 = smov 96  }
   0x4   :  { %vm26_vm1 = vcmp.ge.s32.totalorder %v25_v3, 32  ;;  %vm27_vm2 = vcmp.lt.s32.totalorder %v25_v3, 48  ;;  %v38_v16 = vld [vmem:[%s734_s3] sm:$0x1]  ;;  %vm29_vm4 = vcmp.ge.s32.totalorder %v25_v3, 64 }
   0x5   :  { %vm609_vm3 = vmand %vm26_vm1, %vm27_vm2 }
   0x6   :  { %v30_v9 = vsel %vm609_vm3, 1.0, %v567_v8  ;;  %vm32_vm5 = vmor %vm29_vm4, %vm609_vm3 }
   0x7   :  { %v37_v10 = vmul.f32 %v35_v5, %v30_v9  ;;  %v36_v11 = vmul.f32 %v34_v6, %v30_v9  ;;  %v41_v15 = vmul.f32 %v40_v14, %v30_v9  ;;  %v39_v18 = vmul.f32 %v38_v16, %v30_v9 }
   0x8   :  { %v42_v12 = vld [vmem:[#allocation2] sm:$0xff]  ;;  %v631_v25 = vsel %vm29_vm4, 0.0, %v30_v9  ;;  %v633_v27 = vsel %vm32_vm5, 0.0, %v567_v8 }
   0x9   :  { %76 = vmatpush.msra.mxu0 %v37_v10  ;;  %v43_v13 = vld [vmem:[#allocation3] sm:$0xff]  ;;  %135 = vmatpush.msra.mxu1 %v37_v10  ;;  %v623_v17 = vperm.slane %v41_v15, 0  ;;  %v626_v21 = vperm.slane %v39_v18, 0 }
   0xa   :  { %87 = vrot.lane.b32.xlu1 %v43_v13, %s568_s21  ;;  %190 = vmatpush.msra.mxu2 %v37_v10 }
   0xb   :  { %77 = vmatpush.msra.mxu0 %v36_v11  ;;  %136 = vmatpush.msra.mxu1 %v36_v11 }
   0xc   :  { %507 = vmatmul.msk.f32.vlgmr.msra.gmra.mxu0 %vm21_vm0, %v42_v12  ;;  %191 = vmatpush.msra.mxu2 %v36_v11 }
   0xd   :  { %245 = vmatpush.msra.mxu3 %v37_v10  ;;  %300 = vmatpush.msrb.mxu0 %v37_v10 }
   0xe   :  { %355 = vmatpush.msrb.mxu1 %v37_v10  ;;  %410 = vmatpush.msrb.mxu2 %v37_v10 }
   0xf   :  { %246 = vmatpush.msra.mxu3 %v36_v11  ;;  %301 = vmatpush.msrb.mxu0 %v36_v11 }
  0x10   :  { %356 = vmatpush.msrb.mxu1 %v36_v11  ;;  %411 = vmatpush.msrb.mxu2 %v36_v11 }
  0x11   :  { %465 = vmatpush.msrb.mxu3 %v37_v10 }
  0x13   :  { %466 = vmatpush.msrb.mxu3 %v36_v11  ;;  %v512_v11 = vld [vmem:[%s731_s0 + $0x18] sm:$0xff] }
  0x74   :  { %v48_v19 = vpop.permute.xlu0 %47 }
  0x75   :  { %v53_v20 = vmul.f32 %v623_v17, %v48_v19 }
  0x77   :  { %v57_v22 = vadd.f32 %v626_v21, %v53_v20 }
  0x7c   :  { %v88_v33 = vpop.permute.xlu1 %87 }
  0x89   :  { %v79_v23 = vpop.f32.mrf.mxu0 }
  0x8a   :  { %v82_v24 = vadd.f32 %v79_v23, %v57_v22 }
  0x8c   :  { %533 = vtanh.f32 %v82_v24 }
  0x92   :  { %v534_v26 = vpop.eup %533 }
  0x93   :  { %v84_v28 = vmul.f32 %v534_v26, %v631_v25  ;;  %v514_v26 = vld [vmem:[%s731_s0 + $0x20] sm:$0xff] }
  0x95   :  { %v85_v29 = vadd.f32 %v84_v28, %v633_v27 }
  0x97   :  { %92 = vrot.lane.b32.xlu0 %v85_v29, %s569_s1  ;;  %v90_v34 = vmul.f32 %v88_v33, %v85_v29 }
  0x9f   :  { %111 = vperm.xlu0 %530, %v508_v30  }
 0x109   :  { %v93_v31 = vpop.permute.xlu0 %92 }
 0x10a   :  { %v95_v32 = vmul.f32 %v93_v31, %v85_v29 }
 0x10c   :  { %97 = vrot.lane.b32.xlu1 %v95_v32, %s568_s21 }
 0x111   :  { %v112_v41 = vpop.permute.xlu0 %111 }
 0x112   :  { %v114_v42 = vmul.f32 %v112_v41, %v623_v17 }
 0x114   :  { %v115_v43 = vadd.f32 %v114_v42, %v626_v21 }
 0x17e   :  { %v98_v35 = vpop.permute.xlu1 %97 }
 0x17f   :  { %v100_v36 = vadd.f32 %v98_v35, %v90_v34 }
 0x181   :  { %535 = vtanh.f32 %v100_v36 }
 0x187   :  { %v536_v37 = vpop.eup %535 }
 0x188   :  { %103 = vrot.lane.b32.xlu2 %v536_v37, %s570_s26 }
 0x1e2   :  { %v104_v38 = vpop.permute.xlu2 %103 }
 0x1e3   :  { %v106_v39 = vmul.f32 %v104_v38, %v85_v29 }
 0x1e5   :  { %117 = vrot.lane.b32.xlu2 %v106_v39, %s571_s27 }
 0x23f   :  { %v118_v40 = vpop.permute.xlu2 %117 }
 0x240   :  { %509 = vmatmul.msk.f32.vlgmr.msra.gmra.mxu1 %vm21_vm0, %v118_v40 }
 0x2bd   :  { %v138_v44 = vpop.f32.mrf.mxu1 }
 0x2be   :  { %v141_v45 = vadd.f32 %v138_v44, %v115_v43 }
 0x2c0   :  { %537 = vtanh.f32 %v141_v45  ;;  %v516_v45 = vld [vmem:[%s731_s0 + $0x28] sm:$0xff] }
 0x2c6   :  { %v538_v46 = vpop.eup %537 }
 0x2c7   :  { %v143_v47 = vmul.f32 %v538_v46, %v631_v25 }
 0x2c9   :  { %v144_v48 = vadd.f32 %v143_v47, %v633_v27 }
 0x2cb   :  { %147 = vrot.lane.b32.xlu1 %v144_v48, %s569_s1  ;;  %v145_v51 = vmul.f32 %v144_v48, %v100_v36 }
 0x33d   :  { %v148_v49 = vpop.permute.xlu1 %147 }
 0x33e   :  { %v150_v50 = vmul.f32 %v148_v49, %v144_v48 }
 0x340   :  { %152 = vrot.lane.b32.xlu2 %v150_v50, %s568_s21 }
 0x348   :  { %166 = vperm.xlu2 %531, %v510_v57  }
 0x39a   :  { %v153_v52 = vpop.permute.xlu2 %152 }
 0x39b   :  { %v155_v53 = vadd.f32 %v153_v52, %v145_v51 }
 0x39d   :  { %539 = vtanh.f32 %v155_v53 }
 0x3a2   :  { %v167_v59 = vpop.permute.xlu2 %166 }
 0x3a3   :  { %v540_v54 = vpop.eup %539  ;;  %v169_v60 = vmul.f32 %v167_v59, %v623_v17 }
 0x3a4   :  { %158 = vrot.lane.b32.xlu0 %v540_v54, %s570_s26 }
 0x3a5   :  { %v170_v61 = vadd.f32 %v169_v60, %v626_v21 }
 0x416   :  { %v159_v55 = vpop.permute.xlu0 %158 }
 0x417   :  { %v161_v56 = vmul.f32 %v159_v55, %v144_v48 }
 0x419   :  { %172 = vrot.lane.b32.xlu1 %v161_v56, %s571_s27 }
 0x48b   :  { %v173_v58 = vpop.permute.xlu1 %172 }
 0x48c   :  { %511 = vmatmul.msk.f32.vlgmr.msra.gmra.mxu2 %vm21_vm0, %v173_v58 }
 0x50f   :  { %v193_v62 = vpop.f32.mrf.mxu2 }
 0x510   :  { %v196_v63 = vadd.f32 %v193_v62, %v170_v61 }
 0x512   :  { %541 = vtanh.f32 %v196_v63  ;;  %v518_v63 = vld [vmem:[%s731_s0 + $0x30] sm:$0xff] }
 0x518   :  { %v542_v0 = vpop.eup %541 }
 0x519   :  { %v198_v1 = vmul.f32 %v542_v0, %v631_v25 }
 0x51b   :  { %v199_v2 = vadd.f32 %v198_v1, %v633_v27 }
 0x51d   :  { %202 = vrot.lane.b32.xlu0 %v199_v2, %s569_s1  ;;  %v200_v5 = vmul.f32 %v199_v2, %v155_v53 }
 0x58f   :  { %v203_v3 = vpop.permute.xlu0 %202 }
 0x590   :  { %v205_v4 = vmul.f32 %v203_v3, %v199_v2 }
 0x592   :  { %207 = vrot.lane.b32.xlu1 %v205_v4, %s568_s21 }
 0x59a   :  { %221 = vperm.xlu1 %532, %v512_v11  }
 0x604   :  { %v208_v6 = vpop.permute.xlu1 %207 }
 0x605   :  { %v210_v7 = vadd.f32 %v208_v6, %v200_v5 }
 0x607   :  { %543 = vtanh.f32 %v210_v7 }
 0x60c   :  { %v222_v13 = vpop.permute.xlu1 %221 }
 0x60d   :  { %v544_v8 = vpop.eup %543  ;;  %v224_v14 = vmul.f32 %v222_v13, %v623_v17 }
 0x60e   :  { %213 = vrot.lane.b32.xlu2 %v544_v8, %s570_s26 }
 0x60f   :  { %v225_v15 = vadd.f32 %v224_v14, %v626_v21 }
 0x668   :  { %v214_v9 = vpop.permute.xlu2 %213 }
 0x669   :  { %v216_v10 = vmul.f32 %v214_v9, %v199_v2 }
 0x66b   :  { %227 = vrot.lane.b32.xlu0 %v216_v10, %s571_s27 }
 0x6dd   :  { %v228_v12 = vpop.permute.xlu0 %227 }
 0x6de   :  { %513 = vmatmul.msk.f32.vlgmr.msra.gmra.mxu3 %vm21_vm0, %v228_v12 }
 0x761   :  { %v248_v16 = vpop.f32.mrf.mxu3 }
 0x762   :  { %v251_v18 = vadd.f32 %v248_v16, %v225_v15 }
 0x764   :  { %545 = vtanh.f32 %v251_v18  ;;  %v520_v18 = vld [vmem:[%s731_s0 + $0x38] sm:$0xff]  ;;  %s572_s0 = smov 112  }
 0x76a   :  { %v546_v19 = vpop.eup %545 }
 0x76b   :  { %v253_v20 = vmul.f32 %v546_v19, %v631_v25 }
 0x76d   :  { %v254_v22 = vadd.f32 %v253_v20, %v633_v27 }
 0x76f   :  { %257 = vrot.lane.b32.xlu2 %v254_v22, %s569_s1  ;;  %v255_v28 = vmul.f32 %v254_v22, %v210_v7 }
 0x7c9   :  { %v258_v23 = vpop.permute.xlu2 %257 }
 0x7ca   :  { %v260_v24 = vmul.f32 %v258_v23, %v254_v22 }
 0x7cc   :  { %262 = vrot.lane.b32.xlu0 %v260_v24, %s568_s21 }
 0x7d4   :  { %276 = vperm.xlu0 %530, %v514_v26  }
 0x83e   :  { %v263_v29 = vpop.permute.xlu0 %262 }
 0x83f   :  { %v265_v30 = vadd.f32 %v263_v29, %v255_v28 }
 0x841   :  { %547 = vtanh.f32 %v265_v30 }
 0x846   :  { %v277_v35 = vpop.permute.xlu0 %276 }
 0x847   :  { %v548_v31 = vpop.eup %547  ;;  %v279_v36 = vmul.f32 %v277_v35, %v623_v17 }
 0x848   :  { %268 = vrot.lane.b32.xlu1 %v548_v31, %s570_s26 }
 0x849   :  { %v280_v37 = vadd.f32 %v279_v36, %v626_v21 }
 0x8ba   :  { %v269_v32 = vpop.permute.xlu1 %268 }
 0x8bb   :  { %v271_v33 = vmul.f32 %v269_v32, %v254_v22 }
 0x8bd   :  { %282 = vrot.lane.b32.xlu2 %v271_v33, %s571_s27 }
 0x917   :  { %v283_v34 = vpop.permute.xlu2 %282 }
 0x918   :  { %515 = vmatmul.msk.f32.vlgmr.msrb.gmra.mxu0 %vm21_vm0, %v283_v34 }
 0x995   :  { %v303_v38 = vpop.f32.mrf.mxu0 }
 0x996   :  { %v306_v39 = vadd.f32 %v303_v38, %v280_v37 }
 0x998   :  { %549 = vtanh.f32 %v306_v39 }
 0x99e   :  { %v550_v40 = vpop.eup %549 }
 0x99f   :  { %v308_v41 = vmul.f32 %v550_v40, %v631_v25 }
 0x9a1   :  { %v309_v42 = vadd.f32 %v308_v41, %v633_v27 }
 0x9a3   :  { %312 = vrot.lane.b32.xlu1 %v309_v42, %s569_s1  ;;  %v310_v46 = vmul.f32 %v309_v42, %v265_v30 }
 0xa15   :  { %v313_v43 = vpop.permute.xlu1 %312 }
 0xa16   :  { %v315_v44 = vmul.f32 %v313_v43, %v309_v42 }
 0xa18   :  { %317 = vrot.lane.b32.xlu2 %v315_v44, %s568_s21 }
 0xa20   :  { %331 = vperm.xlu2 %531, %v516_v45  }
 0xa72   :  { %v318_v47 = vpop.permute.xlu2 %317 }
 0xa73   :  { %v320_v48 = vadd.f32 %v318_v47, %v310_v46 }
 0xa75   :  { %551 = vtanh.f32 %v320_v48 }
 0xa7a   :  { %v332_v53 = vpop.permute.xlu2 %331 }
 0xa7b   :  { %v552_v49 = vpop.eup %551  ;;  %v334_v54 = vmul.f32 %v332_v53, %v623_v17 }
 0xa7c   :  { %323 = vrot.lane.b32.xlu0 %v552_v49, %s570_s26 }
 0xa7d   :  { %v335_v55 = vadd.f32 %v334_v54, %v626_v21 }
 0xaee   :  { %v324_v50 = vpop.permute.xlu0 %323 }
 0xaef   :  { %v326_v51 = vmul.f32 %v324_v50, %v309_v42 }
 0xaf1   :  { %337 = vrot.lane.b32.xlu1 %v326_v51, %s571_s27 }
 0xb63   :  { %v338_v52 = vpop.permute.xlu1 %337 }
 0xb64   :  { %517 = vmatmul.msk.f32.vlgmr.msrb.gmra.mxu1 %vm21_vm0, %v338_v52 }
 0xbe1   :  { %v358_v56 = vpop.f32.mrf.mxu1 }
 0xbe2   :  { %v361_v57 = vadd.f32 %v358_v56, %v335_v55 }
 0xbe4   :  { %553 = vtanh.f32 %v361_v57 }
 0xbea   :  { %v554_v58 = vpop.eup %553 }
 0xbeb   :  { %v363_v59 = vmul.f32 %v554_v58, %v631_v25 }
 0xbed   :  { %v364_v60 = vadd.f32 %v363_v59, %v633_v27 }
 0xbef   :  { %367 = vrot.lane.b32.xlu0 %v364_v60, %s569_s1  ;;  %v365_v0 = vmul.f32 %v364_v60, %v320_v48 }
 0xc61   :  { %v368_v61 = vpop.permute.xlu0 %367 }
 0xc62   :  { %v370_v62 = vmul.f32 %v368_v61, %v364_v60 }
 0xc64   :  { %372 = vrot.lane.b32.xlu1 %v370_v62, %s568_s21 }
 0xc6c   :  { %386 = vperm.xlu1 %532, %v518_v63  }
 0xcd6   :  { %v373_v1 = vpop.permute.xlu1 %372 }
 0xcd7   :  { %v375_v2 = vadd.f32 %v373_v1, %v365_v0 }
 0xcd9   :  { %555 = vtanh.f32 %v375_v2 }
 0xcde   :  { %v387_v7 = vpop.permute.xlu1 %386 }
 0xcdf   :  { %v556_v3 = vpop.eup %555  ;;  %v389_v8 = vmul.f32 %v387_v7, %v623_v17 }
 0xce0   :  { %378 = vrot.lane.b32.xlu2 %v556_v3, %s570_s26 }
 0xce1   :  { %v390_v9 = vadd.f32 %v389_v8, %v626_v21 }
 0xd3a   :  { %v379_v4 = vpop.permute.xlu2 %378 }
 0xd3b   :  { %v381_v5 = vmul.f32 %v379_v4, %v364_v60 }
 0xd3d   :  { %392 = vrot.lane.b32.xlu0 %v381_v5, %s571_s27 }
 0xdaf   :  { %v393_v6 = vpop.permute.xlu0 %392 }
 0xdb0   :  { %519 = vmatmul.msk.f32.vlgmr.msrb.gmra.mxu2 %vm21_vm0, %v393_v6 }
 0xe33   :  { %v413_v10 = vpop.f32.mrf.mxu2 }
 0xe34   :  { %v416_v11 = vadd.f32 %v413_v10, %v390_v9 }
 0xe36   :  { %557 = vtanh.f32 %v416_v11 }
 0xe3c   :  { %v558_v12 = vpop.eup %557 }
 0xe3d   :  { %v418_v13 = vmul.f32 %v558_v12, %v631_v25 }
 0xe3f   :  { %v419_v14 = vadd.f32 %v418_v13, %v633_v27 }
 0xe41   :  { %422 = vrot.lane.b32.xlu2 %v419_v14, %s569_s1  ;;  %v420_v19 = vmul.f32 %v419_v14, %v375_v2 }
 0xe9b   :  { %v423_v15 = vpop.permute.xlu2 %422 }
 0xe9c   :  { %v425_v16 = vmul.f32 %v423_v15, %v419_v14 }
 0xe9e   :  { %427 = vrot.lane.b32.xlu0 %v425_v16, %s568_s21 }
 0xea6   :  { %441 = vperm.xlu0 %530, %v520_v18  }
 0xf10   :  { %v428_v20 = vpop.permute.xlu0 %427 }
 0xf11   :  { %v430_v22 = vadd.f32 %v428_v20, %v420_v19 }
 0xf13   :  { %559 = vtanh.f32 %v430_v22 }
 0xf18   :  { %v442_v29 = vpop.permute.xlu0 %441 }
 0xf19   :  { %v560_v23 = vpop.eup %559  ;;  %v444_v30 = vmul.f32 %v442_v29, %v623_v17 }
 0xf1a   :  { %433 = vrot.lane.b32.xlu1 %v560_v23, %s570_s26 }
 0xf1b   :  { %v445_v31 = vadd.f32 %v444_v30, %v626_v21 }
 0xf8c   :  { %v434_v24 = vpop.permute.xlu1 %433 }
 0xf8d   :  { %v436_v26 = vmul.f32 %v434_v24, %v419_v14 }
 0xf8f   :  { %447 = vrot.lane.b32.xlu2 %v436_v26, %s571_s27 }
 0xfe9   :  { %v448_v28 = vpop.permute.xlu2 %447 }
 0xfea   :  { %521 = vmatmul.msk.f32.vlgmr.msrb.gmra.mxu3 %vm21_vm0, %v448_v28 }
0x106d   :  { %v468_v32 = vpop.f32.mrf.mxu3 }
0x106e   :  { %v471_v33 = vadd.f32 %v468_v32, %v445_v31 }
0x1070   :  { %561 = vtanh.f32 %v471_v33 }
0x1076   :  { %v562_v34 = vpop.eup %561 }
0x1077   :  { %v473_v35 = vmul.f32 %v562_v34, %v631_v25 }
0x1079   :  { %v474_v36 = vadd.f32 %v473_v35, %v633_v27 }
0x107b   :  { %477 = vrot.lane.b32.xlu1 %v474_v36, %s569_s1  ;;  %v475_v39 = vmul.f32 %v474_v36, %v430_v22 }
0x10ed   :  { %v478_v37 = vpop.permute.xlu1 %477 }
0x10ee   :  { %v480_v38 = vmul.f32 %v478_v37, %v474_v36 }
0x10f0   :  { %482 = vrot.lane.b32.xlu2 %v480_v38, %s568_s21 }
0x114a   :  { %v483_v40 = vpop.permute.xlu2 %482 }
0x114b   :  { %v485_v41 = vadd.f32 %v483_v40, %v475_v39 }
0x114d   :  { %563 = vtanh.f32 %v485_v41  ;;  %498 = vrot.lane.b32.xlu2 %v485_v41, %s572_s0 }
0x1153   :  { %v564_v17 = vpop.eup %563 }
0x1154   :  { %488 = vrot.lane.b32.xlu0 %v564_v17, %s570_s26 }
0x11a7   :  { %v499_v21 = vpop.permute.xlu2 %498 }
0x11a8   :  { %501 = vst.msk [vmem:[#allocation3] sm:$0xff] %vm21_vm0, %v499_v21 }
0x11c6   :  { %v489_v25 = vpop.permute.xlu0 %488 }
0x11c7   :  { %v491_v27 = vmul.f32 %v489_v25, %v474_v36 }
0x11c9   :  { %493 = vrot.lane.b32.xlu1 %v491_v27, %s571_s27 }
0x123b   :  { %v494_v42 = vpop.permute.xlu1 %493 }
0x123c   :  { %496 = vst.msk [vmem:[#allocation2] sm:$0xff] %vm21_vm0, %v494_v42 }
0x123d   :  { %502 = vst.msk [vmem:[%s735_s4] sm:$0xff] %vm21_vm0, %v494_v42 }

</bundles_post_ra>
